<compile_context>
chip_gen: v7x
topology: tpu7x:2x2x1
jax: 0.10.0
libtpu: 0.0.40
codegen_flags: <defaults>
</compile_context>

<pallas_src>
import jax
import jax.numpy as jnp
from jax.experimental import pallas as pl
from jax.experimental.pallas import tpu as pltpu


def _round_up(x, m):
    return ((x + m - 1) // m) * m


def _vmem_limit_bytes():
    """Per-generation VMEM request: ~100 MiB on 128 MiB parts (v5e/v6e),
    ~48 MiB on v7x (64 MiB physical per TensorCore).  Never request the full
    physical size -- Mosaic needs headroom for internal scratch/semaphores."""
    mib = 1024 * 1024
    phys = 64 * mib  # conservative fallback == v7x per-TC physical VMEM
    try:
        phys = int(pltpu.get_tpu_info().vmem_capacity_bytes)
    except Exception:
        pass
    return max(32 * mib, min(phys - 16 * mib, 100 * mib))


def _vmem_footprint_bytes(tile_m, tile_s, d, in_bytes, out_bytes):
    """Approximate VMEM footprint of one grid step (with pipelining buffers)."""
    x_buf = 1 * tile_m * d * in_bytes          # Buffered(1): constant over S sweep
    w_enc = 2 * d * tile_s * in_bytes          # double-buffered weight stream
    w_dec = 2 * tile_s * d * in_bytes
    bias_thr = 2 * 8 * tile_s * 4              # (2, tile_s) f32, 8-sublane padded
    b_dec = 2 * 8 * d * 4
    out_buf = 1 * tile_m * d * out_bytes       # Buffered(1)
    acc = tile_m * d * 4                       # f32 accumulator scratch
    temps = 2 * tile_m * tile_s * 4            # pre / f live values
    return x_buf + w_enc + w_dec + bias_thr + b_dec + out_buf + acc + temps


def _spec(shape, index_map, buffers=None):
    """BlockSpec with optional explicit buffer count (graceful fallback)."""
    if buffers is not None and hasattr(pl, "Buffered"):
        try:
            return pl.BlockSpec(shape, index_map,
                                pipeline_mode=pl.Buffered(buffers))
        except TypeError:
            pass
    return pl.BlockSpec(shape, index_map)


def jumprelu_ae_kernel(x_ref, w_enc_ref, bt_ref, w_dec_ref, b_dec_ref,
                       xhat_ref, acc_ref):
    s = pl.program_id(1)

    @pl.when(s == 0)
    def _init():
        acc_ref[...] = jnp.zeros_like(acc_ref)

    bt = bt_ref[...]                       # (2, tile_s): [b_enc; threshold]

    # encode for this dict tile: pre = x @ W_enc[:, s_tile] + b_enc[s_tile]
    # bf16 MXU operands, f32 accumulation.
    pre = jnp.dot(x_ref[...], w_enc_ref[...],
                  preferred_element_type=jnp.float32) + bt[0:1, :]

    # JumpReLU with the ReLU folded into the threshold row:
    #   relu(pre * (pre > thr)) == where(pre > max(thr, 0), pre, 0)
    thr_eff = jnp.maximum(bt[1:2, :], 0.0)
    f = jnp.where(pre > thr_eff, pre, 0.0)

    # partial decode: accumulate f @ W_dec[s_tile, :] into the f32 scratch.
    acc_ref[...] += jnp.dot(f.astype(w_dec_ref.dtype), w_dec_ref[...],
                            preferred_element_type=jnp.float32)

    @pl.when(s == pl.num_programs(1) - 1)
    def _finalize():
        # b_dec added exactly once, on the final S tile.
        xhat_ref[...] = (acc_ref[...] + b_dec_ref[...]).astype(xhat_ref.dtype)


def jumprelu_autoencoder_forward(x, w_enc, b_enc, threshold, w_dec, b_dec,
                                 *, tile_m=512, tile_s=1024,
                                 compute_dtype=jnp.bfloat16):
    """x: [B, activation_dim] -> x_hat: [B, activation_dim] (x.dtype)."""
    B, D = x.shape
    D2, S = w_enc.shape
    assert D == D2 and w_dec.shape == (S, D)
    assert b_enc.shape == (S,) and threshold.shape == (S,) and b_dec.shape == (D,)

    out_dtype = x.dtype
    in_bytes = jnp.dtype(compute_dtype).itemsize
    out_bytes = jnp.dtype(out_dtype).itemsize

    # ---- batch tiling: large row tiles (arithmetic intensity ~ tile_m) ----
    tile_m = _round_up(max(8, min(tile_m, _round_up(B, 8))), 8)
    # Megacore: with a large batch, make sure there are >= 2 batch tiles so a
    # second TensorCore (v7x) is never idle.
    if B >= 256 and _round_up(B, tile_m) // tile_m < 2:
        tile_m = _round_up((B + 1) // 2, 8)

    # ---- dict-dim tiling: MXU-aligned (256 for v6e/v7x 2x256x256 passes) ----
    if S <= tile_s:
        tile_s = S
    else:
        align = 256 if tile_s >= 256 else 128
        tile_s = _round_up(tile_s, align)

    # ---- shrink tiles against the per-generation VMEM budget ----
    vmem_limit = _vmem_limit_bytes()
    budget = int(vmem_limit * 0.85)
    min_tile_s = min(S, 256)
    min_tile_m = min(_round_up(B, 8), 64)
    while _vmem_footprint_bytes(tile_m, tile_s, D, in_bytes, out_bytes) > budget:
        if tile_s > min_tile_s and tile_s > 128:
            tile_s = max(128, _round_up(tile_s // 2, 128))
        elif tile_m > min_tile_m and tile_m > 8:
            tile_m = max(8, _round_up(tile_m // 2, 8))
        else:
            break

    if tile_s >= S:
        tile_s = S
        Sp = S
    else:
        Sp = _round_up(S, tile_s)
    Bp = _round_up(B, tile_m)

    # bf16 matmul operands (f32 accumulation inside the kernel).
    xc = x.astype(compute_dtype)
    w_enc_c = w_enc.astype(compute_dtype)
    w_dec_c = w_dec.astype(compute_dtype)

    # zero-pad batch rows (sliced off at the end) and dict columns/rows
    # (zero pre + zero threshold -> gate closed -> no contribution).
    if Bp != B:
        xc = jnp.pad(xc, ((0, Bp - B), (0, 0)))
    if Sp != S:
        w_enc_c = jnp.pad(w_enc_c, ((0, 0), (0, Sp - S)))
        w_dec_c = jnp.pad(w_dec_c, ((0, Sp - S), (0, 0)))
        b_enc = jnp.pad(b_enc, (0, Sp - S))
        threshold = jnp.pad(threshold, (0, Sp - S))

    # Pack b_enc and threshold into one (2, Sp) f32 array -> single small DMA.
    bt = jnp.stack([b_enc.astype(jnp.float32),
                    threshold.astype(jnp.float32)], axis=0)
    b_dec2 = b_dec.astype(jnp.float32).reshape(1, D)

    grid = (Bp // tile_m, Sp // tile_s)

    out = pl.pallas_call(
        jumprelu_ae_kernel,
        out_shape=jax.ShapeDtypeStruct((Bp, D), out_dtype),
        grid_spec=pltpu.PrefetchScalarGridSpec(
            num_scalar_prefetch=0,
            grid=grid,
            in_specs=[
                # x tile: constant across the S sweep -> single buffer.
                _spec((tile_m, D), lambda i, s: (i, 0), buffers=1),
                pl.BlockSpec((D, tile_s), lambda i, s: (0, s)),   # W_enc cols
                pl.BlockSpec((2, tile_s), lambda i, s: (0, s)),   # [b_enc; thr]
                pl.BlockSpec((tile_s, D), lambda i, s: (s, 0)),   # W_dec rows
                pl.BlockSpec((1, D), lambda i, s: (0, 0)),        # b_dec
            ],
            # output written once per batch tile -> single buffer.
            out_specs=_spec((tile_m, D), lambda i, s: (i, 0), buffers=1),
            scratch_shapes=[pltpu.VMEM((tile_m, D), jnp.float32)],  # x_hat acc
        ),
        compiler_params=pltpu.CompilerParams(
            dimension_semantics=("parallel", "arbitrary"),
            vmem_limit_bytes=vmem_limit,
        ),
    )(xc, w_enc_c, bt, w_dec_c, b_dec2)

    return out[:B] if Bp != B else out


def init_params(activation_dim, dict_size, key):
    """Deterministic re-implementation of JumpReluAutoEncoder.__init__ setup."""
    # kaiming_uniform_ on torch.empty(dict_size, activation_dim):
    # fan_in = activation_dim, bound = sqrt(6 / fan_in)
    bound = jnp.sqrt(6.0 / activation_dim)
    w_dec = jax.random.uniform(key, (dict_size, activation_dim),
                               minval=-bound, maxval=bound, dtype=jnp.float32)
    w_dec = w_dec / jnp.linalg.norm(w_dec, axis=1, keepdims=True)
    w_enc = w_dec.T
    b_enc = jnp.zeros((dict_size,), jnp.float32)
    b_dec = jnp.zeros((activation_dim,), jnp.float32)
    threshold = jnp.ones((dict_size,), jnp.float32) * 0.001
    return w_enc, b_enc, threshold, w_dec, b_dec


def reference_forward(x, w_enc, b_enc, threshold, w_dec, b_dec,
                      compute_dtype=jnp.bfloat16):
    """Pure-JAX reference with the same bf16-operand / f32-accumulate scheme."""
    xc = x.astype(compute_dtype)
    pre = jnp.dot(xc, w_enc.astype(compute_dtype),
                  preferred_element_type=jnp.float32) + b_enc
    f = jnp.where(pre > threshold, jnp.maximum(pre, 0.0), 0.0)
    xhat = jnp.dot(f.astype(compute_dtype), w_dec.astype(compute_dtype),
                   preferred_element_type=jnp.float32) + b_dec
    return xhat.astype(x.dtype)


if __name__ == "__main__":
    key = jax.random.PRNGKey(0)
    k_param, k_x = jax.random.split(key)

    # Small demo shapes chosen to exercise batch padding (20 -> 24 rows),
    # dict-dim tiling + padding (320 -> 3 tiles of 128), and the accumulator.
    batch = 20
    activation_dim = 128
    dict_size = 320

    w_enc, b_enc, threshold, w_dec, b_dec = init_params(
        activation_dim, dict_size, k_param)
    x = jax.random.normal(k_x, (batch, activation_dim), dtype=jnp.float32)

    x_hat = jumprelu_autoencoder_forward(
        x, w_enc, b_enc, threshold, w_dec, b_dec,
        tile_m=8, tile_s=128)           # small tiles so the demo grid is 3x3
    x_hat = jax.block_until_ready(x_hat)

    x_hat_ref = reference_forward(x, w_enc, b_enc, threshold, w_dec, b_dec)
    assert x_hat.shape == (batch, activation_dim)
    assert jnp.allclose(x_hat, x_hat_ref, atol=2e-3, rtol=2e-3), (
        float(jnp.max(jnp.abs(x_hat - x_hat_ref))))

    print("KERNEL_OK")
</pallas_src>

<mosaic_0001>
module attributes {stable_mosaic.version = 11 : i64} {
  func.func @jumprelu_ae_kernel(%arg0: i32, %arg1: i32, %arg2: memref<8x128xbf16, #tpu.memory_space<vmem>>, %arg3: memref<128x128xbf16, #tpu.memory_space<vmem>>, %arg4: memref<2x128xf32, #tpu.memory_space<vmem>>, %arg5: memref<128x128xbf16, #tpu.memory_space<vmem>>, %arg6: memref<1x128xf32, #tpu.memory_space<vmem>>, %arg7: memref<8x128xf32, #tpu.memory_space<vmem>>, %arg8: memref<8x128xf32, #tpu.memory_space<vmem>>) attributes {dimension_semantics = [#tpu.dimension_semantics<parallel>, #tpu.dimension_semantics<arbitrary>], iteration_bounds = array<i64: 3, 3>, scalar_prefetch = 0 : i64, scratch_operands = 1 : i64, tpu.core_type = #tpu.core_type<tc>, window_params = [{pipeline_mode = #tpu.pipeline_mode<synchronous>, transform_indices = @transform_0, window_bounds = array<i64: 8, 128>}, {transform_indices = @transform_1, window_bounds = array<i64: 128, 128>}, {transform_indices = @transform_2, window_bounds = array<i64: 2, 128>}, {transform_indices = @transform_3, window_bounds = array<i64: 128, 128>}, {pipeline_mode = #tpu.pipeline_mode<synchronous>, transform_indices = @transform_4, window_bounds = array<i64: 1, 128>}, {pipeline_mode = #tpu.pipeline_mode<synchronous>, transform_indices = @transform_5, window_bounds = array<i64: 8, 128>}]} {
    %c0_i32 = arith.constant 0 : i32
    %0 = arith.cmpi eq, %arg1, %c0_i32 : i32
    %1 = arith.extui %0 : i1 to i32
    %c0_i32_0 = arith.constant 0 : i32
    %2 = arith.cmpi ne, %1, %c0_i32_0 : i32
    scf.if %2 {
      %cst_16 = arith.constant 0.000000e+00 : f32
      %26 = vector.broadcast %cst_16 : f32 to vector<8x128xf32>
      %c0_17 = arith.constant 0 : index
      %c0_18 = arith.constant 0 : index
      %27 = vector.load %arg8[%c0_17, %c0_18] : memref<8x128xf32, #tpu.memory_space<vmem>>, vector<8x128xf32>
      tpu.vector_store %arg8[%c0_17, %c0_18], %26 {strides = array<i32>} : memref<8x128xf32, #tpu.memory_space<vmem>>, vector<8x128xf32>,
    } else {
    }
    %c0 = arith.constant 0 : index
    %c0_1 = arith.constant 0 : index
    %3 = vector.load %arg4[%c0, %c0_1] : memref<2x128xf32, #tpu.memory_space<vmem>>, vector<2x128xf32>
    %c0_2 = arith.constant 0 : index
    %c0_3 = arith.constant 0 : index
    %4 = vector.load %arg2[%c0_2, %c0_3] : memref<8x128xbf16, #tpu.memory_space<vmem>>, vector<8x128xbf16>
    %c0_4 = arith.constant 0 : index
    %c0_5 = arith.constant 0 : index
    %5 = vector.load %arg3[%c0_4, %c0_5] : memref<128x128xbf16, #tpu.memory_space<vmem>>, vector<128x128xbf16>
    %cst = arith.constant dense<0.000000e+00> : vector<8x128xf32>
    %6 = tpu.matmul %4, %5, %cst {dimension_numbers = #tpu.dot_dimension_numbers<[1], [0], [0], [1], [0, 0, 1, 1], [], []>} : vector<8x128xbf16>, vector<128x128xbf16>, vector<8x128xf32> -> vector<8x128xf32>
    %7 = vector.extract_strided_slice %3 {offsets = [0, 0], sizes = [1, 128], strides = [1, 1]} : vector<2x128xf32> to vector<1x128xf32>
    %8 = vector.broadcast %7 : vector<1x128xf32> to vector<8x128xf32>
    %9 = arith.addf %6, %8 : vector<8x128xf32>
    %10 = vector.extract_strided_slice %3 {offsets = [1, 0], sizes = [1, 128], strides = [1, 1]} : vector<2x128xf32> to vector<1x128xf32>
    %cst_6 = arith.constant 0.000000e+00 : f32
    %11 = vector.broadcast %cst_6 : f32 to vector<1x128xf32>
    %12 = arith.maximumf %10, %11 : vector<1x128xf32>
    %13 = vector.broadcast %12 : vector<1x128xf32> to vector<8x128xf32>
    %14 = arith.cmpf ogt, %9, %13 : vector<8x128xf32>
    %cst_7 = arith.constant 0.000000e+00 : f32
    %15 = vector.broadcast %cst_7 : f32 to vector<8x128xf32>
    %16 = arith.select %14, %9, %15 : vector<8x128xi1>, vector<8x128xf32>
    %c0_8 = arith.constant 0 : index
    %c0_9 = arith.constant 0 : index
    %17 = vector.load %arg8[%c0_8, %c0_9] : memref<8x128xf32, #tpu.memory_space<vmem>>, vector<8x128xf32>
    %18 = arith.truncf %16 : vector<8x128xf32> to vector<8x128xbf16>
    %c0_10 = arith.constant 0 : index
    %c0_11 = arith.constant 0 : index
    %19 = vector.load %arg5[%c0_10, %c0_11] : memref<128x128xbf16, #tpu.memory_space<vmem>>, vector<128x128xbf16>
    %cst_12 = arith.constant dense<0.000000e+00> : vector<8x128xf32>
    %20 = tpu.matmul %18, %19, %cst_12 {dimension_numbers = #tpu.dot_dimension_numbers<[1], [0], [0], [1], [0, 0, 1, 1], [], []>} : vector<8x128xbf16>, vector<128x128xbf16>, vector<8x128xf32> -> vector<8x128xf32>
    %21 = arith.addf %17, %20 : vector<8x128xf32>
    %c0_13 = arith.constant 0 : index
    %c0_14 = arith.constant 0 : index
    %22 = vector.load %arg8[%c0_13, %c0_14] : memref<8x128xf32, #tpu.memory_space<vmem>>, vector<8x128xf32>
    tpu.vector_store %arg8[%c0_13, %c0_14], %21 {strides = array<i32>} : memref<8x128xf32, #tpu.memory_space<vmem>>, vector<8x128xf32>,
    %c2_i32 = arith.constant 2 : i32
    %23 = arith.cmpi eq, %arg1, %c2_i32 : i32
    %24 = arith.extui %23 : i1 to i32
    %c0_i32_15 = arith.constant 0 : i32
    %25 = arith.cmpi ne, %24, %c0_i32_15 : i32
    scf.if %25 {
      %c0_16 = arith.constant 0 : index
      %c0_17 = arith.constant 0 : index
      %26 = vector.load %arg8[%c0_16, %c0_17] : memref<8x128xf32, #tpu.memory_space<vmem>>, vector<8x128xf32>
      %c0_18 = arith.constant 0 : index
      %c0_19 = arith.constant 0 : index
      %27 = vector.load %arg6[%c0_18, %c0_19] : memref<1x128xf32, #tpu.memory_space<vmem>>, vector<1x128xf32>
      %28 = vector.broadcast %27 : vector<1x128xf32> to vector<8x128xf32>
      %29 = arith.addf %26, %28 : vector<8x128xf32>
      %c0_20 = arith.constant 0 : index
      %c0_21 = arith.constant 0 : index
      %30 = vector.load %arg7[%c0_20, %c0_21] : memref<8x128xf32, #tpu.memory_space<vmem>>, vector<8x128xf32>
      tpu.vector_store %arg7[%c0_20, %c0_21], %29 {strides = array<i32>} : memref<8x128xf32, #tpu.memory_space<vmem>>, vector<8x128xf32>,
    } else {
    }
    return
  }
  func.func @transform_0(%arg0: i32, %arg1: i32) -> (i32, i32) {
    %c0_i32 = arith.constant 0 : i32
    %c0_i32_0 = arith.constant 0 : i32
    return %arg0, %c0_i32 : i32, i32
  }
  func.func @transform_1(%arg0: i32, %arg1: i32) -> (i32, i32) {
    %c0_i32 = arith.constant 0 : i32
    %c0_i32_0 = arith.constant 0 : i32
    return %c0_i32, %arg1 : i32, i32
  }
  func.func @transform_2(%arg0: i32, %arg1: i32) -> (i32, i32) {
    %c0_i32 = arith.constant 0 : i32
    %c0_i32_0 = arith.constant 0 : i32
    return %c0_i32, %arg1 : i32, i32
  }
  func.func @transform_3(%arg0: i32, %arg1: i32) -> (i32, i32) {
    %c0_i32 = arith.constant 0 : i32
    %c0_i32_0 = arith.constant 0 : i32
    return %arg1, %c0_i32 : i32, i32
  }
  func.func @transform_4(%arg0: i32, %arg1: i32) -> (i32, i32) {
    %c0_i32 = arith.constant 0 : i32
    %c0_i32_0 = arith.constant 0 : i32
    %c0_i32_1 = arith.constant 0 : i32
    return %c0_i32, %c0_i32_0 : i32, i32
  }
  func.func @transform_5(%arg0: i32, %arg1: i32) -> (i32, i32) {
    %c0_i32 = arith.constant 0 : i32
    %c0_i32_0 = arith.constant 0 : i32
    return %arg0, %c0_i32 : i32, i32
  }
}

</mosaic_0001>

<bundles_post_ra>
// kernel: tpu_custom_call.1
= control target key start
LH: loop header
LB: loop body
LE: loop exit
PB: predicated region body
PF: predicated region fallthrough
CT: control target
= control target key end

     0   :  { %s1511_s0 = inlined_call_operand.hbm [shape: bf16[24,128], index: 0, kind: input, shape index: {}]   ;;  %s1512_s1 = inlined_call_operand.hbm [shape: bf16[128,384], index: 1, kind: input, shape index: {}]   ;;  %s1513_s2 = inlined_call_operand.vmem [shape: f32[2,384], index: 2, kind: input, shape index: {}]   ;;  %s1514_s3 = inlined_call_operand.hbm [shape: bf16[384,128], index: 3, kind: input, shape index: {}]   ;;  %s1515_s4 = inlined_call_operand.vmem [shape: f32[1,128], index: 4, kind: input, shape index: {}]   ;;  %s1516_s5 = inlined_call_operand.hbm [shape: f32[24,128], index: 5, kind: output, shape index: {}]  }
   0x1   :  { %1534 = sst [smem:[#allocation22_spill]] %s1512_s1 }
   0x2   :  { %10 = vsyncpa [#allocation4], 0 }
   0x3   :  { %11 = vsyncpa [#allocation7], 0 }
   0x4   :  { %13 = vsyncpa [#allocation7 + $0x1], 0 }
   0x5   :  { %14 = vsyncpa [#allocation5], 0  ;;  %s1173_s18 = smov 0   ;;  %s1175_s19 = smov 0  }
   0x6   :  { %s1177_s20 = smov 0   ;;  %s1179_s21 = smov 0  }
   0x7   :  { %s1181_s22 = smov 0   ;;  %s1183_s23 = smov 0  }
   0x8   :  { %s1185_s24 = smov 0   ;;  %s1187_s25 = smov 0  }
   0x9   :  { %s1189_s26 = smov 0   ;;  %s1191_s27 = smov 0  }
   0xa   :  { %s1193_s28 = smov 0  }
   0xb LB: > { %1535 = sst [smem:[#allocation13_spill]] %s1099_s20  ;;  %s29_s29 = sadd.s32 1, %s1123_s26  ;;  %s1131_s28 = sphi %s1193_s28, %s20_s28   ;;  %s1127_s27 = sphi %s1191_s27, %s1569_s27   ;;  %s1123_s26 = sphi %s1189_s26, %s1568_s26   ;;  %s1119_s25 = sphi %s1187_s25, %s1567_s25   ;;  %s1115_s24 = sphi %s1185_s24, %s1566_s24   ;;  %s1111_s23 = sphi %s1183_s23, %s1573_s23   ;;  %s1107_s22 = sphi %s1181_s22, %s1572_s22   ;;  %s1103_s21 = sphi %s1179_s21, %s1563_s21   ;;  %s1099_s20 = sphi %s1177_s20, %s1562_s20   ;;  %s1095_s19 = sphi %s1175_s19, %s1571_s19   ;;  %s1091_s18 = sphi %s1173_s18, %s1570_s18  }
   0xc   : > { %1536 = sst [smem:[#allocation14_spill]] %s1107_s22  ;;  %s65_s30 = sadd.s32 1, %s1099_s20 }
   0xd   : > { %1537 = sst [smem:[#allocation15_spill]] %s1111_s23  ;;  %p1230_p0 = scmp.ge.s32.totalorder %s29_s29, 3 }
   0xe   : > { %1538 = sst [smem:[#allocation16_spill]] %s1123_s26  ;;  %p72_p1 = scmp.ne.s32.totalorder %s1099_s20, %s1095_s19 }
   0xf   : > { %1539 = sst [smem:[#allocation17_spill]] %s1127_s27  ;;  %p73_p2 = scmp.eq.s32.totalorder %s1131_s28, 0 }
  0x10   : > { %s1575_s29 = smov (%p1230_p0, %s29_s29), 0  ;;  %p802_p4 = scmp.lt.s32.totalorder %s1131_s28, 9 }
  0x11   : > { %1541 = sst [smem:[#allocation18_spill]] %s1575_s29  ;;  %p74_p3 = por %p73_p2, %p72_p1 }
  0x12   : > { %s62_s7 = ssub.s32 %s1123_s26, %s1575_s29  ;;  %s217_s8 = sand.u32 1, %s1131_s28  }
  0x13   : > { %p63_p5 = scmp.eq.s32.totalorder %s62_s7, 0  ;;  %s219_s9 = sand.u32 1, %s1099_s20  }
  0x14   : > { %s691_s10 = sshll.u32 %s1123_s26, 6  ;;  %s1250_s12 = sshll.u32 %s219_s9, 6 }
  0x15   : > { %s1248_s11 = scalar_select %p63_p5, %s1099_s20, %s65_s30  }
  0x16   : > { %s1543_s1 = sld [smem:[#allocation22_spill]]  ;;  %p1257_p6 = pnand %p802_p4, %p74_p3 }
  0x17   : > { %1542 = sst [smem:[#allocation19_spill]] %s1248_s11  ;;  %s221_s17 = scalar_lea.vmem [#allocation6], %s1250_s12 }
  0x18   : > { %s1544_s16 = scalar_select %p1257_p6, 1, 0 }
  0x19   : > { %s227_s30 = sshll.u32 %s221_s17, 4  ;;  %s1264_s7 = scalar_lea.sflag [#allocation7], %s217_s8  ;;  %s1262_s30 = int_to_ptr.vmem [resolvable:$true] %s227_s30 }
  0x1a   : > { %p1526_p8 = pneg %p1257_p6 }
  0x1c   : > { %s1255_s15 = scalar_lea.hbm %s1543_s1, %s691_s10  ;;  %s920_s14 = scalar_lea.hbm %s1543_s1, 3072 }
  0x1d   : > { %s915_s9 = scalar_lea.hbm %s1255_s15, 1024  ;;  %p921_p11 = scmp.lt.u32.totalorder %s1255_s15, %s1543_s1 }
  0x1e   : > { %p916_p7 = scmp.ne.s32.totalorder %s1255_s15, %s915_s9  ;;  %p922_p12 = scmp.lt.u32.totalorder %s920_s14, %s915_s9 }
  0x1f   : > { %p924_p1 = scmp.lt.u32.totalorder %s915_s9, %s1255_s15 }
  0x20   : > { %p918_p9 = pnand %p1526_p8, %p916_p7  ;;  %p923_p13 = por %p922_p12, %p921_p11 }
  0x22   : > { %p919_p10 = pneg %p918_p9  ;;  %p925_p2 = por %p924_p1, %p923_p13 }
  0x24   : > { %p926_p3 = pnand %p925_p2, %p919_p10 }
  0x26   : > { %929 = shalt.err (!%p926_p3)
}
  0x27   : > { %s930_s8 = scalar_lea.vmem %s1262_s30, 1024  ;;  %s1133_s17 = smov [#allocation6]  }
  0x28   : > { %p931_p4 = scmp.ne.s32.totalorder %s1262_s30, %s930_s8  ;;  %s935_s10 = sshll.u32 %s1133_s17, 4  ;;  %s936_s10 = int_to_ptr.vmem [resolvable:$false] %s935_s10 }
  0x29   : > { %s937_s29 = scalar_lea.vmem %s936_s10, 2048  ;;  %p938_p9 = scmp.lt.s32.totalorder %s1262_s30, %s936_s10 }
  0x2a   : > { %p933_p5 = pnand %p931_p4, %p1526_p8  ;;  %p939_p11 = scmp.lt.s32.totalorder %s937_s29, %s930_s8 }
  0x2c   : > { %p934_p7 = pneg %p933_p5  ;;  %p940_p12 = por %p939_p11, %p938_p9 }
  0x2e   : > { %p941_p13 = pnand %p940_p12, %p934_p7 }
  0x30   : > { %944 = shalt.err (!%p941_p13)
}
  0x31   : > { %s1134_s11 = smov 192   ;;  %s1518_s9 = smov 64  }
  0x32   : > { %s1519_s13 = smov 4   ;;  %s1295_s14 = sadd.s32 4294967295, %s1131_s28  }
  0x33   : > { %798 = dma.hbm_to_vmem [thread:$0]  (!%p1257_p6), %s1255_s15, 1024, %s1262_s30, %s1264_s7, %s1134_s11, %s1518_s9, %s1519_s13  }
  0x34   : > { %s32_s8 = sadd.s32 1, %s1127_s27  ;;  %s39_s17 = sadd.s32 1, %s1111_s23 }
  0x35   : > { %s1577_s8 = smov (!%p1230_p0, %s32_s8), %s1127_s27  ;;  %p52_p10 = scmp.ne.s32.totalorder %s1107_s22, %s1103_s21 }
  0x36   : > { %p34_p1 = scmp.ge.s32.totalorder %s1577_s8, 3  ;;  %p53_p2 = scmp.eq.s32.totalorder %s1295_s14, 0 }
  0x37   : > { %p78_p3 = scmp.ne.s32.totalorder %s1095_s19, %s1091_s18  ;;  %p174_p4 = scmp.ne.s32.totalorder %s1111_s23, %s1107_s22 }
  0x38   : > { %s1579_s8 = smov (%p34_p1, %s1577_s8), 0  ;;  %p1311_p5 = por %p53_p2, %p52_p10 }
  0x39   : > { %1545 = sst [smem:[#allocation20_spill]] %s1579_s8  ;;  %p1315_p7 = por %p78_p3, %p53_p2 }
  0x3a   : > { %s1546_s15 = scalar_select %p1311_p5, 1, 0 }
  0x3b   : > { %s1547_s6 = scalar_select %p1315_p7, 1, 0 }
  0x3c   : > { %s36_s30 = ssub.s32 %s1127_s27, %s1579_s8  ;;  %p175_p0 = scmp.eq.s32.totalorder %s1295_s14, 8 }
  0x3d   : > { %p37_p9 = scmp.eq.s32.totalorder %s36_s30, 0  ;;  %p687_p11 = scmp.ge.s32.totalorder %s1131_s28, 1 }
  0x3e   : > { %p1323_p12 = por %p175_p0, %p174_p4  ;;  %p188_p13 = scmp.lt.s32.totalorder %s1131_s28, 10 }
  0x3f   : > { %s1329_s21 = scalar_select %p37_p9, %s1111_s23, %s39_s17  }
  0x40   : > { %s1548_s18 = scalar_select %p1323_p12, 1, 0 }
  0x41   : > { %1549 = sst [smem:[#allocation21_spill]] %s1329_s21  ;;  %p1331_p10 = pnand %p687_p11, %p188_p13 }
  0x42   : > { %s688_s29 = sshll.u32 %s1119_s25, 6  ;;  %s1137_s30 = smov [#allocation3]  }
  0x43   : > { %s1550_s10 = scalar_select %p1331_p10, 1, 0 }
  0x44   : > { %s1339_s13 = scalar_lea.hbm %s1511_s0, %s688_s29  ;;  %p791_p1 = pneg %p1331_p10 }
  0x45   : > { %s203_s1 = sshll.u32 %s1137_s30, 4  ;;  %s724_s9 = sshll.u32 %s1123_s26, 10  ;;  %s1343_s1 = int_to_ptr.vmem [resolvable:$true] %s203_s1 }
  0x46   : > { %p1347_p2 = pnand %p791_p1, %p1311_p5  ;;  %s1355_s8 = scalar_lea.hbm %s1514_s3, %s724_s9 }
  0x47   : > { %s248_s27 = scalar_lea.vmem [#allocation8], %s1250_s12  ;;  %s945_s30 = scalar_lea.hbm %s1339_s13, 64 }
  0x48   : > { %s255_s21 = sshll.u32 %s248_s27, 4  ;;  %p946_p3 = scmp.ne.s32.totalorder %s1339_s13, %s945_s30  ;;  %s1358_s21 = int_to_ptr.vmem [resolvable:$true] %s255_s21 }
  0x49   : > { %p947_p4 = pneg %p1347_p2  ;;  %s950_s26 = scalar_lea.hbm %s1511_s0, 192 }
  0x4a   : > { %p951_p11 = scmp.lt.u32.totalorder %s1339_s13, %s1511_s0  ;;  %p952_p13 = scmp.lt.u32.totalorder %s950_s26, %s945_s30 }
  0x4b   : > { %p948_p0 = pnand %p947_p4, %p946_p3  ;;  %p954_p8 = scmp.lt.u32.totalorder %s945_s30, %s1339_s13 }
  0x4c   : > { %p953_p1 = por %p952_p13, %p951_p11 }
  0x4d   : > { %p949_p9 = pneg %p948_p0 }
  0x4e   : > { %p955_p12 = por %p954_p8, %p953_p1 }
  0x50   : > { %p956_p7 = pnand %p955_p12, %p949_p9 }
  0x52   : > { %959 = shalt.err (!%p956_p7)
}
  0x53   : > { %s960_s27 = scalar_lea.vmem %s1343_s1, 64  ;;  %p968_p10 = scmp.lt.s32.totalorder %s1343_s1, %s1343_s1 }
  0x54   : > { %p961_p3 = scmp.ne.s32.totalorder %s1343_s1, %s960_s27  ;;  %p969_p6 = scmp.lt.s32.totalorder %s960_s27, %s960_s27 }
  0x56   : > { %p963_p0 = pnand %p961_p3, %p947_p4  ;;  %p970_p11 = por %p969_p6, %p968_p10 }
  0x58   : > { %p964_p5 = pneg %p963_p0 }
  0x5a   : > { %p971_p13 = pnand %p970_p11, %p964_p5 }
  0x5c   : > { %974 = shalt.err (!%p971_p13)
}
  0x5d   : > { %794 = dma.hbm_to_vmem [thread:$0]  (!%p1347_p2), %s1339_s13, 64, %s1343_s1, [#allocation4]  }
  0x5e   : > { %s975_s20 = scalar_lea.hbm %s1355_s8, 1024  ;;  %p1552_p7 = scmp.ne.s32.totalorder %s1544_s16, 0 }
  0x5f   : > { %p976_p8 = scmp.ne.s32.totalorder %s1355_s8, %s975_s20  ;;  %s980_s26 = scalar_lea.hbm %s1514_s3, 3072 }
  0x60   : > { %p1553_p12 = pneg %p1552_p7  ;;  %p981_p6 = scmp.lt.u32.totalorder %s1355_s8, %s1514_s3 }
  0x61   : > { %p982_p5 = scmp.lt.u32.totalorder %s980_s26, %s975_s20  ;;  %p984_p1 = scmp.lt.u32.totalorder %s975_s20, %s1355_s8 }
  0x62   : > { %p978_p4 = pnand %p976_p8, %p1553_p12 }
  0x63   : > { %p983_p10 = por %p982_p5, %p981_p6 }
  0x64   : > { %p979_p9 = pneg %p978_p4 }
  0x65   : > { %p985_p3 = por %p984_p1, %p983_p10 }
  0x67   : > { %p986_p0 = pnand %p985_p3, %p979_p9 }
  0x69   : > { %989 = shalt.err (!%p986_p0)
}
  0x6a   : > { %s990_s1 = scalar_lea.vmem %s1358_s21, 1024  ;;  %p1554_p11 = pmov %p1553_p12 }
  0x6b   : > { %p991_p2 = scmp.ne.s32.totalorder %s1358_s21, %s990_s1  ;;  %s1138_s13 = smov [#allocation8]  }
  0x6c   : > { %s995_s9 = sshll.u32 %s1138_s13, 4  ;;  %s996_s9 = int_to_ptr.vmem [resolvable:$false] %s995_s9 }
  0x6d   : > { %p993_p13 = pnand %p991_p2, %p1554_p11  ;;  %s997_s11 = scalar_lea.vmem %s996_s9, 2048 }
  0x6e   : > { %p998_p12 = scmp.lt.s32.totalorder %s1358_s21, %s996_s9  ;;  %p999_p4 = scmp.lt.s32.totalorder %s997_s11, %s990_s1 }
  0x6f   : > { %p994_p8 = pneg %p993_p13 }
  0x70   : > { %p1000_p6 = por %p999_p4, %p998_p12 }
  0x72   : > { %p1001_p5 = pnand %p1000_p6, %p994_p8 }
  0x74   : > { %1004 = shalt.err (!%p1001_p5)
}
  0x75   : > { %s1555_s30 = smov 4   ;;  %s1556_s29 = smov 64  }
  0x76   : > { %801 = dma.hbm_to_vmem [thread:$0]  (!%p1552_p7), %s1355_s8, 1024, %s1358_s21, %s1264_s7, %s1556_s29, %s1556_s29, %s1555_s30  }
  0x77   : > { %p1557_p9 = scmp.ne.s32.totalorder %s1550_s10, 0 }
  0x78   : > { %p1558_p10 = scmp.ne.s32.totalorder (!%p1557_p9), %s1546_s15, 0 }
  0x79   : > { %267 = sbr.rel (%p1557_p9) target bundleno = 644 (0x284), region = 40 }
  0x80   : > { %1078 = dma.done.wait (%p1558_p10), [#allocation4], 64  }
  0x81   : > { %1080 = vsyncadd (%p1558_p10), [#allocation4], 4294967232  ;;  %s273_s16 = sand.u32 1, %s1295_s14   ;;  %s275_s27 = sand.u32 1, %s1095_s19  }
  0x82   : > { %s696_s20 = sshll.u32 %s275_s27, 6  ;;  %s274_s22 = scalar_lea.sflag [#allocation7], %s273_s16 }
  0x83   : > { %s1421_s23 = scalar_lea.vmem [#allocation6], %s696_s20  ;;  %p1559_p1 = scmp.ne.s32.totalorder %s1547_s6, 0 }
  0x85   : > { %1082 = dma.done.wait (%p1559_p1), %s274_s22, 2048  }
  0x86   : > { %1084 = vsyncadd (%p1559_p1), %s274_s22, 4294965248  ;;  %p317_p7 = scmp.lt.s32.totalorder %s1115_s24, 2  ;;  %s1434_s14 = scalar_lea.vmem [#allocation8], %s696_s20 }
  0x87   : > { %p699_p3 = scmp.ne.s32.totalorder %s1115_s24, 0 }
  0x88   : > { %s318_s7 = scalar_select %p317_p7, %s1115_s24, 2 }
  0x89   : > { %326 = sbr.rel (%p699_p3) target bundleno = 144 (0x90), region = 56  ;;  %v1139_v0 = vmov (!%p699_p3), 0.0  }
  0x8a   : > { %s698_s8 = sshll.u32 %s318_s7, 1  ;;  %327 = vst [vmem:[#allocation2] sm:$0xff] (!%p699_p3), %v1139_v0 }
  0x8b   : > { %s1432_s10 = scalar_lea.vmem %s1513_s2, %s698_s8 }
  0x90 PF: > { %v899_v1 = vld [vmem:[%s1421_s23] sm:$0xff]   ;;  %v1140_v2 = vmov 0.0   ;;  %v900_v3 = vld [vmem:[%s1421_s23 + $0x8] sm:$0xff]   ;;  %vm1141_vm0 = vmmov 0   ;;  %v901_v4 = vld [vmem:[%s1421_s23 + $0x10] sm:$0xff]   ;;  %v346_v19 = vlaneseq  ;;  %p719_p0 = scmp.ne.s32.totalorder %s1115_s24, 2 }
  0x91   : > { %743 = vmatprep.subr.bf16.mxu0 %v1140_v2  ;;  %763 = vmatprep.subr.bf16.mxu1 %v1140_v2  ;;  %v907_v5 = vld [vmem:[%s1434_s14] sm:$0xff]   ;;  %v902_v6 = vld [vmem:[%s1421_s23 + $0x18] sm:$0xff]   ;;  %v908_v7 = vld [vmem:[%s1434_s14 + $0x8] sm:$0xff]  }
  0x92   : > { %744 = vmatpush3.bf16.msra.mxu0 %v899_v1  ;;  %759 = vmatprep.mubr.msk.bf16.mxu0 %vm1141_vm0, %v1140_v2  ;;  %v903_v8 = vld [vmem:[%s1421_s23 + $0x20] sm:$0xff]   ;;  %v909_v9 = vld [vmem:[%s1434_s14 + $0x10] sm:$0xff]   ;;  %v904_v10 = vld [vmem:[%s1421_s23 + $0x28] sm:$0xff]   ;;  %v347_v20 = vshrl.u32 %v346_v19, 7 }
  0x93   : > { %745 = vmatprep.subr.bf16.mxu0 %v1140_v2  ;;  %779 = vmatprep.mubr.msk.bf16.mxu1 %vm1141_vm0, %v1140_v2  ;;  %v910_v11 = vld [vmem:[%s1434_s14 + $0x18] sm:$0xff]   ;;  %v905_v12 = vld [vmem:[%s1421_s23 + $0x30] sm:$0xff]   ;;  %v911_v13 = vld [vmem:[%s1434_s14 + $0x20] sm:$0xff]  }
  0x94   : > { %764 = vmatpush3.bf16.msra.mxu1 %v907_v5  ;;  %v906_v14 = vld [vmem:[%s1421_s23 + $0x38] sm:$0xff]   ;;  %v912_v15 = vld [vmem:[%s1434_s14 + $0x28] sm:$0xff]   ;;  %v913_v17 = vld [vmem:[%s1434_s14 + $0x30] sm:$0xff]   ;;  %v348_v22 = vsub.s32 0, %v347_v20  ;;  %v441_v24 = vsub.s32 1, %v347_v20 }
  0x95   : > { %765 = vmatprep.subr.bf16.mxu1 %v1140_v2  ;;  %v329_v16 = vld [vmem:[#allocation3] sm:$0xf]  ;;  %v328_v21 = vld [vmem:[%s1432_s10] sm:$0x3] }
  0x96   : > { %746 = vmatpush3.bf16.msra.mxu0 %v900_v3  ;;  %v914_v18 = vld [vmem:[%s1434_s14 + $0x38] sm:$0xff]   ;;  %v438_v23 = vmax.f32 %v328_v21, 0.0  ;;  %v349_v25 = vrot.slane %v328_v21, %v348_v22  ;;  %v720_v40 = vld [vmem:[%s1515_s4] ss:$0 sm:$0xff] (!%p719_p0) }
  0x97   : > { %747 = vmatprep.subr.bf16.mxu0 %v1140_v2  ;;  %v445_v33 = vld [vmem:[#allocation2] sm:$0xff] }
  0x98   : > { %766 = vmatpush3.bf16.msra.mxu1 %v908_v7  ;;  %v442_v26 = vrot.slane %v438_v23, %v441_v24 }
  0x99   : > { %767 = vmatprep.subr.bf16.mxu1 %v1140_v2 }
  0x9a   : > { %748 = vmatpush3.bf16.msra.mxu0 %v901_v4 }
  0x9b   : > { %749 = vmatprep.subr.bf16.mxu0 %v1140_v2 }
  0x9c   : > { %768 = vmatpush3.bf16.msra.mxu1 %v909_v9 }
  0x9d   : > { %769 = vmatprep.subr.bf16.mxu1 %v1140_v2 }
  0x9e   : > { %750 = vmatpush3.bf16.msra.mxu0 %v902_v6 }
  0x9f   : > { %751 = vmatprep.subr.bf16.mxu0 %v1140_v2 }
  0xa0   : > { %770 = vmatpush3.bf16.msra.mxu1 %v910_v11 }
  0xa1   : > { %771 = vmatprep.subr.bf16.mxu1 %v1140_v2 }
  0xa2   : > { %752 = vmatpush3.bf16.msra.mxu0 %v903_v8 }
  0xa3   : > { %753 = vmatprep.subr.bf16.mxu0 %v1140_v2 }
  0xa4   : > { %772 = vmatpush3.bf16.msra.mxu1 %v911_v13 }
  0xa5   : > { %773 = vmatprep.subr.bf16.mxu1 %v1140_v2 }
  0xa6   : > { %754 = vmatpush3.bf16.msra.mxu0 %v904_v10 }
  0xa7   : > { %755 = vmatprep.subr.bf16.mxu0 %v1140_v2 }
  0xa8   : > { %774 = vmatpush3.bf16.msra.mxu1 %v912_v15 }
  0xa9   : > { %775 = vmatprep.subr.bf16.mxu1 %v1140_v2 }
  0xaa   : > { %756 = vmatpush3.bf16.msra.mxu0 %v905_v12 }
  0xab   : > { %757 = vmatprep.subr.bf16.mxu0 %v1140_v2 }
  0xac   : > { %776 = vmatpush3.bf16.msra.mxu1 %v913_v17 }
  0xad   : > { %777 = vmatprep.subr.bf16.mxu1 %v1140_v2 }
  0xae   : > { %758 = vmatpush3.bf16.msra.mxu0 %v906_v14 }
  0xb0   : > { %778 = vmatpush3.bf16.msra.mxu1 %v914_v18 }
  0xb1   : > { %760 = vmatmul.mubr.bf16.vlgmr.msra.gmra.mrb[0].mxu0 %v329_v16 }
 0x184   : > { %v432_v27 = vpop.f32.mrb[0].mxu0 }
 0x185   : > { %v433_v28 = vadd.f32 %v432_v27, %v349_v25  ;;  %v761_v29 = vpop.f32.mrb[1].mxu0 }
 0x186   : > { %v435_v30 = vpop.f32.mrb[2].mxu0 }
 0x187   : > { %vm443_vm1 = vcmp.gt.f32.partialorder %v433_v28, %v442_v26  ;;  %v717_v31 = vpack.c.bf16 %v433_v28, %v433_v28  ;;  %v762_v32 = vpop.f32.mrb[3].mxu0 }
 0x188   : > { %vm716_vm2 = vmpackc.low %vm443_vm1, %vm443_vm1 }
 0x189   : > { %780 = vmatmul.mubr.msk.bf16.vlgmr.msra.gmra.mrb[0].mxu1 %vm716_vm2, %v717_v31 }
 0x259   : > { %556 = sbr.rel (%p719_p0) target bundleno = 618 (0x26a), region = 60 }
 0x25c   : > { %v545_v34 = vpop.f32.mrb[0].mxu1 }
 0x25d   : > { %v551_v35 = vadd.f32 %v545_v34, %v445_v33  ;;  %v781_v36 = vpop.f32.mrb[1].mxu1 }
 0x25e   : > { %v548_v37 = vpop.f32.mrb[2].mxu1 }
 0x25f   : > { %552 = vst [vmem:[#allocation2] sm:$0xff] %v551_v35  ;;  %v782_v38 = vpop.f32.mrb[3].mxu1 }
 0x266   : > { %v557_v39 = vld [vmem:[#allocation2] sm:$0xff] }
 0x267   : > { %v565_v41 = vadd.f32 %v720_v40, %v557_v39 }
 0x269   : > { %566 = vst [vmem:[#allocation9] sm:$0xff] %v565_v41 }
 0x26a PF: > { %s721_s12 = sshll.u32 %s1119_s25, 7  ;;  %s1142_s9 = smov [#allocation9]  }
 0x26b   : > { %s574_s13 = scalar_lea.hbm %s1516_s5, %s721_s12  ;;  %s576_s11 = sshll.u32 %s1142_s9, 4  ;;  %s577_s11 = int_to_ptr.vmem [resolvable:$true] %s576_s11 }
 0x26c   : > { %s1005_s24 = scalar_lea.vmem %s577_s11, 128  ;;  %p1560_p11 = scmp.ne.s32.totalorder %s1548_s18, 0 }
 0x26d   : > { %p1006_p2 = scmp.ne.s32.totalorder %s577_s11, %s1005_s24  ;;  %p1012_p12 = scmp.lt.s32.totalorder %s577_s11, %s577_s11 }
 0x26e   : > { %p1013_p4 = scmp.lt.s32.totalorder %s1005_s24, %s1005_s24 }
 0x26f   : > { %p1007_p13 = pnand %p1006_p2, %p1560_p11 }
 0x270   : > { %p1014_p6 = por %p1013_p4, %p1012_p12 }
 0x271   : > { %p1008_p8 = pneg %p1007_p13 }
 0x273   : > { %p1015_p5 = pnand %p1014_p6, %p1008_p8 }
 0x275   : > { %1018 = shalt.err (!%p1015_p5)
}
 0x276   : > { %s1019_s30 = scalar_lea.hbm %s574_s13, 128  ;;  %s1023_s16 = scalar_lea.hbm %s1516_s5, 384 }
 0x277   : > { %p1020_p9 = scmp.ne.s32.totalorder %s574_s13, %s1019_s30  ;;  %p1024_p7 = scmp.lt.u32.totalorder %s574_s13, %s1516_s5 }
 0x278   : > { %p1025_p3 = scmp.lt.u32.totalorder %s1023_s16, %s1019_s30  ;;  %p1027_p2 = scmp.lt.u32.totalorder %s1019_s30, %s574_s13 }
 0x279   : > { %p1021_p10 = pnand %p1020_p9, %p1560_p11 }
 0x27a   : > { %p1026_p0 = por %p1025_p3, %p1024_p7 }
 0x27b   : > { %p1022_p1 = pneg %p1021_p10 }
 0x27c   : > { %p1028_p13 = por %p1027_p2, %p1026_p0 }
 0x27e   : > { %p1029_p8 = pnand %p1028_p13, %p1022_p1 }
 0x280   : > { %1032 = shalt.err (!%p1029_p8)
}
 0x281   : > { %789 = dma.vmem_to_hbm [thread:$0]  (%p1560_p11), %s577_s11, 128, %s574_s13, [#allocation5]  }
 0x282   : > { %1086 = dma.done.wait (%p1560_p11), [#allocation5], 128  }
 0x283   : > { %1088 = vsyncadd (%p1560_p11), [#allocation5], 4294967168 }
 0x284 PF: > { %s20_s28 = sadd.s32 1, %s1131_s28   ;;  %s1561_s22 = sld [smem:[#allocation13_spill]] }
 0x285   : > { %p17_p12 = scmp.ge.s32.totalorder %s20_s28, 11   ;;  %s1562_s20 = sld [smem:[#allocation19_spill]] }
 0x286   : > { %s1563_s21 = sld [smem:[#allocation14_spill]]  ;;  %s1564_s23 = sld [smem:[#allocation15_spill]] }
 0x287   : > { %s1565_s7 = sld [smem:[#allocation21_spill]]  ;;  %s1566_s24 = sld [smem:[#allocation16_spill]] }
 0x288   : > { %s1567_s25 = sld [smem:[#allocation17_spill]]  ;;  %s1568_s26 = sld [smem:[#allocation18_spill]] }
 0x289   : > { %s1569_s27 = sld [smem:[#allocation20_spill]]  ;;  %s1570_s18 = smov %s1095_s19 }
 0x28a   : > { %s1571_s19 = smov %s1561_s22  ;;  %19 = sbr.rel (!%p17_p12) target bundleno = 11 (0xb), region = 106 }
 0x28c   : > { %s1572_s22 = smov %s1564_s23 }
 0x28d   : > { %s1573_s23 = smov %s1565_s7 }
 0x291   :  { %589 = vsyncpa [#allocation4], 1 }
 0x292   :  { %591 = vsyncpa [#allocation4 + $0x1], 1 }
 0x293   :  { %592 = vsyncpa [#allocation7], 1 }
 0x294   :  { %594 = vsyncpa [#allocation7 + $0x1], 1 }
 0x295   :  { %595 = vsyncpa [#allocation5], 1 }
 0x296   :  { %597 = vsyncpa [#allocation5 + $0x1], 1 }

</bundles_post_ra>
